<compile_context>
chip_gen: v6e
topology: v6e:2x2x1
jax: 0.10.0
libtpu: 0.0.40
codegen_flags: <defaults>
</compile_context>

<pallas_src>
import functools

import jax
import jax.numpy as jnp
from jax import lax
from jax.experimental import pallas as pl
from jax.experimental.pallas import tpu as pltpu

_LANE = 128
_ROW_PACK = 16               # row granularity safe for f32 and bf16 packing
_SLAB_ELEMS = 8192           # elements per operand per inner-loop step (~8 f32 vregs)
_TARGET_TILE_BYTES = 2 << 20
_MIN_PARALLEL_BLOCKS = 4     # feed both v7x TensorCores when input is big enough


def _round_up(x, m):
    return ((x + m - 1) // m) * m


def _pick_cols(n, cap=512):
    """Largest multiple of 128 (<= cap) that divides n, else 0."""
    best = 0
    c = _LANE
    while c <= min(cap, n):
        if n % c == 0:
            best = c
        c += _LANE
    return best


def _fused_loss_kernel(a_ref, b_ref, cx_ref, cy_ref, out_ref, *,
                       slab_rows, rows_valid, mse_scale, cls_scale,
                       need_row_mask):
    """One grid step:
      * accumulate mse_scale * sum((a-b)^2) over this row block into a
        lane-dense (8, cols) partial tile,
      * on grid step 0 additionally fold in the (tiny) multi-label
        soft-margin loss sum, already scaled by cls_scale.
    The wrapper's jnp.sum(partials) is then the final loss."""
    block_rows, cols = a_ref.shape
    i = pl.program_id(0)
    num_slabs = block_rows // slab_rows

    def slab_body(s, acc):
        off = pl.multiple_of(s * slab_rows, slab_rows)
        a = a_ref[pl.ds(off, slab_rows), :].astype(jnp.float32)
        b = b_ref[pl.ds(off, slab_rows), :].astype(jnp.float32)
        d = a - b
        sq = d * d
        if need_row_mask:
            r = lax.broadcasted_iota(jnp.int32, (slab_rows, cols), 0)
            valid = (i * block_rows + off + r) < rows_valid
            sq = jnp.where(valid, sq, 0.0)
        return acc + jnp.sum(sq.reshape(slab_rows // 8, 8, cols), axis=0)

    acc = lax.fori_loop(0, num_slabs, slab_body,
                        jnp.zeros((8, cols), jnp.float32),
                        unroll=min(8, num_slabs))
    out_ref[0] = acc * mse_scale

    # The cls tensors are tiny and resident in VMEM (constant index_map):
    # compute their contribution only on the first grid step and place it in
    # lane [0, 0] of this block's partial tile.  (2 EUP transcendentals per
    # element, but only over B x C elements once -> negligible, incl. on v5e.)
    @pl.when(i == 0)
    def _():
        x = cx_ref[...].astype(jnp.float32)
        y = cy_ref[...].astype(jnp.float32)
        # y*softplus(-x) + (1-y)*softplus(x) == softplus(x) - y*x
        # stable softplus: max(x,0) + log(1 + exp(-|x|))
        softplus_x = jnp.maximum(x, 0.0) + jnp.log(1.0 + jnp.exp(-jnp.abs(x)))
        cls_sum = jnp.sum(softplus_x - y * x) * cls_scale
        r8 = lax.broadcasted_iota(jnp.int32, (8, cols), 0)
        c8 = lax.broadcasted_iota(jnp.int32, (8, cols), 1)
        out_ref[0] = out_ref[0] + jnp.where((r8 == 0) & (c8 == 0), cls_sum, 0.0)


def rec_conv5_criterion(cls_scores, rec_result, rec_im, cls_label,
                        size_average=True):
    """Pallas forward of rec_conv5_criterion.forward."""
    del size_average  # unused by the original forward (both losses are 'mean')
    alpha = 0.5
    b, n_cls = cls_scores.shape
    n = rec_result.size

    # ---- lane-dense 2-D view of the rec tensors (no HBM copy when possible)
    cols = _pick_cols(n)
    if cols:
        rows = n // cols
        a2 = rec_result.reshape(rows, cols)    # free, contiguous reshape
        b2 = rec_im.reshape(rows, cols)
    else:
        # Rare fallback: numel not divisible by 128 -> zero-pad the ragged
        # tail (zeros contribute exactly 0 to the squared-error sum).
        # TODO(synk): could be avoided with an extra in-kernel column mask.
        cols = _LANE
        total = _round_up(max(n, 1), cols)
        a2 = jnp.pad(rec_result.reshape(-1), (0, total - n)).reshape(-1, cols)
        b2 = jnp.pad(rec_im.reshape(-1), (0, total - n)).reshape(-1, cols)
        rows = total // cols

    # ---- tiling: slab (inner loop) and row block (grid) sizes
    slab_rows = max(_ROW_PACK, (_SLAB_ELEMS // cols) // _ROW_PACK * _ROW_PACK)
    itemsize = max(rec_result.dtype.itemsize, rec_im.dtype.itemsize)
    block_rows = max(slab_rows,
                     (_TARGET_TILE_BYTES // (cols * itemsize))
                     // slab_rows * slab_rows)
    block_rows = min(block_rows, _round_up(rows, slab_rows))
    # Keep several grid steps when there is enough work so the "parallel"
    # axis can shard across both v7x TensorCores.
    while (block_rows > slab_rows
           and pl.cdiv(rows, block_rows) < _MIN_PARALLEL_BLOCKS):
        block_rows = max(slab_rows, (block_rows // 2) // slab_rows * slab_rows)

    num_blocks = pl.cdiv(rows, block_rows)
    need_row_mask = (rows % block_rows) != 0

    kernel = functools.partial(
        _fused_loss_kernel,
        slab_rows=slab_rows,
        rows_valid=rows,
        mse_scale=(1.0 - alpha) / float(n),
        cls_scale=alpha / float(b * n_cls),
        need_row_mask=need_row_mask,
    )

    vmem_limit = (2 * 2 * block_rows * cols * itemsize   # double-buffered inputs
                  + 2 * 8 * cols * 4                     # double-buffered out tile
                  + (8 << 20))                           # cls blocks, temps, headroom
    vmem_limit = int(min(max(vmem_limit, 16 << 20), 48 << 20))

    partials = pl.pallas_call(
        kernel,
        out_shape=jax.ShapeDtypeStruct((num_blocks, 8, cols), jnp.float32),
        grid_spec=pltpu.PrefetchScalarGridSpec(
            num_scalar_prefetch=0,
            grid=(num_blocks,),
            in_specs=[
                pl.BlockSpec((block_rows, cols), lambda i: (i, 0)),
                pl.BlockSpec((block_rows, cols), lambda i: (i, 0)),
                pl.BlockSpec((b, n_cls), lambda i: (0, 0)),   # tiny, resident
                pl.BlockSpec((b, n_cls), lambda i: (0, 0)),   # tiny, resident
            ],
            out_specs=pl.BlockSpec((1, 8, cols), lambda i: (i, 0, 0)),
        ),
        compiler_params=pltpu.CompilerParams(
            dimension_semantics=("parallel",),
            vmem_limit_bytes=vmem_limit,
        ),
    )(a2, b2, cls_scores, cls_label)

    return jnp.sum(partials)


# ---------------------------------------------------------------------------
# Pure-JAX reference
# ---------------------------------------------------------------------------

def rec_conv5_criterion_ref(cls_scores, rec_result, rec_im, cls_label):
    x = cls_scores.astype(jnp.float32)
    y = cls_label.astype(jnp.float32)
    cls_loss = jnp.mean(-(y * jax.nn.log_sigmoid(x)
                          + (1.0 - y) * jax.nn.log_sigmoid(-x)))
    rec_loss = jnp.mean((rec_result.astype(jnp.float32)
                         - rec_im.astype(jnp.float32)) ** 2)
    return 0.5 * cls_loss + 0.5 * rec_loss


if __name__ == "__main__":
    key = jax.random.PRNGKey(0)
    fn = jax.jit(rec_conv5_criterion)

    # Case 1: small shapes consistent with the module (single grid block,
    # ragged row mask exercised).
    k1, k2, k3, k4, key = jax.random.split(key, 5)
    B, N_CLS = 2, 20
    C, H, W = 4, 16, 16
    cls_scores = jax.random.normal(k1, (B, N_CLS), dtype=jnp.float32)
    cls_label = jax.random.bernoulli(k2, 0.3, (B, N_CLS)).astype(jnp.float32)
    rec_result = jax.random.normal(k3, (B, C, H, W), dtype=jnp.float32)
    rec_im = jax.random.normal(k4, (B, C, H, W), dtype=jnp.float32)

    out = jax.block_until_ready(fn(cls_scores, rec_result, rec_im, cls_label))
    ref = rec_conv5_criterion_ref(cls_scores, rec_result, rec_im, cls_label)
    assert jnp.allclose(out, ref, rtol=1e-5, atol=1e-5), (out, ref)

    # Case 2: slightly larger rec tensor -> multiple grid blocks, no mask;
    # checks that the cls term is added exactly once (grid step 0 only).
    k1, k2, k3, k4, key = jax.random.split(key, 5)
    rec_result2 = jax.random.normal(k3, (B, 8, 32, 32), dtype=jnp.float32)
    rec_im2 = jax.random.normal(k4, (B, 8, 32, 32), dtype=jnp.float32)
    cls_scores2 = jax.random.normal(k1, (B, N_CLS), dtype=jnp.float32)
    cls_label2 = jax.random.bernoulli(k2, 0.3, (B, N_CLS)).astype(jnp.float32)

    out2 = jax.block_until_ready(
        jax.jit(rec_conv5_criterion)(cls_scores2, rec_result2, rec_im2, cls_label2))
    ref2 = rec_conv5_criterion_ref(cls_scores2, rec_result2, rec_im2, cls_label2)
    assert jnp.allclose(out2, ref2, rtol=1e-5, atol=1e-5), (out2, ref2)

    print("KERNEL_OK")
</pallas_src>

<mosaic_0001>
module attributes {stable_mosaic.version = 11 : i64} {
  func.func @_fused_loss_kernel(%arg0: i32, %arg1: memref<16x512xf32, #tpu.memory_space<vmem>>, %arg2: memref<16x512xf32, #tpu.memory_space<vmem>>, %arg3: memref<2x20xf32, #tpu.memory_space<vmem>>, %arg4: memref<2x20xf32, #tpu.memory_space<vmem>>, %arg5: memref<1x8x512xf32, #tpu.memory_space<vmem>>) attributes {dimension_semantics = [#tpu.dimension_semantics<parallel>], iteration_bounds = array<i64: 1>, scalar_prefetch = 0 : i64, scratch_operands = 0 : i64, tpu.core_type = #tpu.core_type<tc>, window_params = [{transform_indices = @transform_0, window_bounds = array<i64: 16, 512>}, {transform_indices = @transform_1, window_bounds = array<i64: 16, 512>}, {pipeline_mode = #tpu.pipeline_mode<synchronous>, transform_indices = @transform_2, window_bounds = array<i64: 2, 20>}, {pipeline_mode = #tpu.pipeline_mode<synchronous>, transform_indices = @transform_3, window_bounds = array<i64: 2, 20>}, {transform_indices = @transform_4, window_bounds = array<i64: 1, 8, 512>}]} {
    %cst = arith.constant 0.000000e+00 : f32
    %0 = vector.broadcast %cst : f32 to vector<8x512xf32>
    %c0_i32 = arith.constant 0 : i32
    %c16_i32 = arith.constant 16 : i32
    %1 = arith.muli %c0_i32, %c16_i32 : i32
    %2 = tpu.assume_multiple %1, 16 : i32
    %3 = arith.index_cast %2 : i32 to index
    %c0 = arith.constant 0 : index
    %4 = vector.load %arg1[%3, %c0] : memref<16x512xf32, #tpu.memory_space<vmem>>, vector<16x512xf32>
    %5 = arith.index_cast %2 : i32 to index
    %c0_0 = arith.constant 0 : index
    %6 = vector.load %arg2[%5, %c0_0] : memref<16x512xf32, #tpu.memory_space<vmem>>, vector<16x512xf32>
    %7 = arith.subf %4, %6 : vector<16x512xf32>
    %8 = arith.mulf %7, %7 : vector<16x512xf32>
    %9 = tpu.iota {dimensions = array<i32: 0>} : vector<16x512xi32>
    %c16_i32_1 = arith.constant 16 : i32
    %10 = arith.muli %arg0, %c16_i32_1 : i32
    %11 = arith.addi %10, %2 : i32
    %12 = vector.broadcast %11 : i32 to vector<16x512xi32>
    %13 = arith.addi %12, %9 : vector<16x512xi32>
    %c4_i32 = arith.constant 4 : i32
    %14 = vector.broadcast %c4_i32 : i32 to vector<16x512xi32>
    %15 = arith.cmpi slt, %13, %14 : vector<16x512xi32>
    %cst_2 = arith.constant 0.000000e+00 : f32
    %16 = vector.broadcast %cst_2 : f32 to vector<16x512xf32>
    %17 = arith.select %15, %8, %16 : vector<16x512xi1>, vector<16x512xf32>
    %18 = vector.shape_cast %17 : vector<16x512xf32> to vector<2x8x512xf32>
    %cst_3 = arith.constant dense<0.000000e+00> : vector<8x512xf32>
    %19 = vector.multi_reduction <add>, %18, %cst_3 [0] : vector<2x8x512xf32> to vector<8x512xf32>
    %20 = arith.addf %0, %19 : vector<8x512xf32>
    %c1_i32 = arith.constant 1 : i32
    %cst_4 = arith.constant 2.44140625E-4 : f32
    %21 = vector.broadcast %cst_4 : f32 to vector<8x512xf32>
    %22 = arith.mulf %20, %21 : vector<8x512xf32>
    %c0_5 = arith.constant 0 : index
    %c0_6 = arith.constant 0 : index
    %c0_7 = arith.constant 0 : index
    %23 = vector.load %arg5[%c0_5, %c0_6, %c0_7] : memref<1x8x512xf32, #tpu.memory_space<vmem>>, vector<1x8x512xf32>
    %24 = vector.shape_cast %23 : vector<1x8x512xf32> to vector<8x512xf32>
    %25 = vector.shape_cast %22 : vector<8x512xf32> to vector<1x8x512xf32>
    tpu.vector_store %arg5[%c0_5, %c0_6, %c0_7], %25 {strides = array<i32>} : memref<1x8x512xf32, #tpu.memory_space<vmem>>, vector<1x8x512xf32>,
    %c0_i32_8 = arith.constant 0 : i32
    %26 = arith.cmpi eq, %arg0, %c0_i32_8 : i32
    %27 = arith.extui %26 : i1 to i32
    %c0_i32_9 = arith.constant 0 : i32
    %28 = arith.cmpi ne, %27, %c0_i32_9 : i32
    scf.if %28 {
      %c0_10 = arith.constant 0 : index
      %c0_11 = arith.constant 0 : index
      %29 = vector.load %arg3[%c0_10, %c0_11] : memref<2x20xf32, #tpu.memory_space<vmem>>, vector<2x20xf32>
      %c0_12 = arith.constant 0 : index
      %c0_13 = arith.constant 0 : index
      %30 = vector.load %arg4[%c0_12, %c0_13] : memref<2x20xf32, #tpu.memory_space<vmem>>, vector<2x20xf32>
      %cst_14 = arith.constant 0.000000e+00 : f32
      %31 = vector.broadcast %cst_14 : f32 to vector<2x20xf32>
      %32 = arith.maximumf %29, %31 : vector<2x20xf32>
      %33 = math.absf %29 : vector<2x20xf32>
      %cst_15 = arith.constant 0.000000e+00 : f32
      %34 = vector.broadcast %cst_15 : f32 to vector<2x20xf32>
      %35 = arith.subf %34, %33 : vector<2x20xf32>
      %36 = math.exp %35 : vector<2x20xf32>
      %cst_16 = arith.constant 1.000000e+00 : f32
      %37 = vector.broadcast %cst_16 : f32 to vector<2x20xf32>
      %38 = arith.addf %37, %36 : vector<2x20xf32>
      %39 = math.log %38 : vector<2x20xf32>
      %40 = arith.addf %32, %39 : vector<2x20xf32>
      %41 = arith.mulf %30, %29 : vector<2x20xf32>
      %42 = arith.subf %40, %41 : vector<2x20xf32>
      %43 = vector.shape_cast %42 : vector<2x20xf32> to vector<1x2x20xf32>
      %cst_17 = arith.constant dense<0.000000e+00> : vector<1xf32>
      %44 = vector.multi_reduction <add>, %43, %cst_17 [1, 2] : vector<1x2x20xf32> to vector<1xf32>
      %45 = vector.shape_cast %44 : vector<1xf32> to vector<1x1x1xf32>
      %46 = vector.extract %45[0, 0, 0] : f32 from vector<1x1x1xf32>
      %cst_18 = arith.constant 1.250000e-02 : f32
      %47 = arith.mulf %46, %cst_18 : f32
      %48 = tpu.iota {dimensions = array<i32: 0>} : vector<8x512xi32>
      %49 = tpu.iota {dimensions = array<i32: 1>} : vector<8x512xi32>
      %c0_19 = arith.constant 0 : index
      %c0_20 = arith.constant 0 : index
      %c0_21 = arith.constant 0 : index
      %50 = vector.load %arg5[%c0_19, %c0_20, %c0_21] : memref<1x8x512xf32, #tpu.memory_space<vmem>>, vector<1x8x512xf32>
      %51 = vector.shape_cast %50 : vector<1x8x512xf32> to vector<8x512xf32>
      %c0_i32_22 = arith.constant 0 : i32
      %52 = vector.broadcast %c0_i32_22 : i32 to vector<8x512xi32>
      %53 = arith.cmpi eq, %48, %52 : vector<8x512xi32>
      %c0_i32_23 = arith.constant 0 : i32
      %54 = vector.broadcast %c0_i32_23 : i32 to vector<8x512xi32>
      %55 = arith.cmpi eq, %49, %54 : vector<8x512xi32>
      %56 = arith.andi %53, %55 : vector<8x512xi1>
      %cst_24 = arith.constant 0.000000e+00 : f32
      %57 = vector.broadcast %47 : f32 to vector<8x512xf32>
      %58 = vector.broadcast %cst_24 : f32 to vector<8x512xf32>
      %59 = arith.select %56, %57, %58 : vector<8x512xi1>, vector<8x512xf32>
      %60 = arith.addf %51, %59 : vector<8x512xf32>
      %c0_25 = arith.constant 0 : index
      %c0_26 = arith.constant 0 : index
      %c0_27 = arith.constant 0 : index
      %61 = vector.load %arg5[%c0_25, %c0_26, %c0_27] : memref<1x8x512xf32, #tpu.memory_space<vmem>>, vector<1x8x512xf32>
      %62 = vector.shape_cast %61 : vector<1x8x512xf32> to vector<8x512xf32>
      %63 = vector.shape_cast %60 : vector<8x512xf32> to vector<1x8x512xf32>
      tpu.vector_store %arg5[%c0_25, %c0_26, %c0_27], %63 {strides = array<i32>} : memref<1x8x512xf32, #tpu.memory_space<vmem>>, vector<1x8x512xf32>,
    } else {
    }
    return
  }
  func.func @transform_0(%arg0: i32) -> (i32, i32) {
    %c0_i32 = arith.constant 0 : i32
    %c0_i32_0 = arith.constant 0 : i32
    return %arg0, %c0_i32 : i32, i32
  }
  func.func @transform_1(%arg0: i32) -> (i32, i32) {
    %c0_i32 = arith.constant 0 : i32
    %c0_i32_0 = arith.constant 0 : i32
    return %arg0, %c0_i32 : i32, i32
  }
  func.func @transform_2(%arg0: i32) -> (i32, i32) {
    %c0_i32 = arith.constant 0 : i32
    %c0_i32_0 = arith.constant 0 : i32
    %c0_i32_1 = arith.constant 0 : i32
    return %c0_i32, %c0_i32_0 : i32, i32
  }
  func.func @transform_3(%arg0: i32) -> (i32, i32) {
    %c0_i32 = arith.constant 0 : i32
    %c0_i32_0 = arith.constant 0 : i32
    %c0_i32_1 = arith.constant 0 : i32
    return %c0_i32, %c0_i32_0 : i32, i32
  }
  func.func @transform_4(%arg0: i32) -> (i32, i32, i32) {
    %c0_i32 = arith.constant 0 : i32
    %c0_i32_0 = arith.constant 0 : i32
    %c0_i32_1 = arith.constant 0 : i32
    return %arg0, %c0_i32, %c0_i32_0 : i32, i32, i32
  }
}

</mosaic_0001>

<bundles_post_ra>
// kernel: rec_conv5_criterion.1
= control target key start
LH: loop header
LB: loop body
LE: loop exit
PB: predicated region body
PF: predicated region fallthrough
CT: control target
= control target key end

     0   :  { %vm129_vm0 = vcmask 156672   ;;  %v54_v14 = vlaneseq  ;;  %s249_s2 = inlined_call_operand.vmem [shape: f32[2,20], index: 2, kind: input, shape index: {}]   ;;  %s250_s3 = inlined_call_operand.vmem [shape: f32[2,20], index: 3, kind: input, shape index: {}]   ;;  %s251_s0 = inlined_call_operand.vmem [shape: f32[4,512], index: 0, kind: input, shape index: {}]   ;;  %s252_s1 = inlined_call_operand.vmem [shape: f32[4,512], index: 1, kind: input, shape index: {}]   ;;  %s253_s4 = inlined_call_operand.vmem [shape: f32[1,8,512], index: 4, kind: output, shape index: {}]  }
   0x1   :  { %v116_v0 = vld [vmem:[%s249_s2] sm:$0x3]  ;;  %v21_v16 = vld [vmem:[%s251_s0 + $0x8] sm:$0xff]  ;;  %v22_v17 = vld [vmem:[%s251_s0 + $0x10] sm:$0xff] }
   0x2   :  { %v119_v1 = vand.u32 2147483647, %v116_v0  ;;  %v117_v6 = vld [vmem:[%s250_s3] sm:$0x3]  ;;  %v118_v7 = vmax.f32 %v116_v0, 0.0  ;;  %v23_v18 = vld [vmem:[%s251_s0 + $0x18] sm:$0xff] }
   0x3   :  { %v127_v10 = vmul.f32 %v117_v6, %v116_v0  ;;  %v20_v15 = vld [vmem:[%s251_s0] sm:$0xff]  ;;  %v31_v20 = vld [vmem:[%s252_s1 + $0x8] sm:$0xff]  ;;  %v32_v21 = vld [vmem:[%s252_s1 + $0x10] sm:$0xff]  ;;  %v55_v25 = vshrl.u32 %v54_v14, 7  ;;  %v142_v43 = vand.u32 127, %v54_v14 }
   0x4   :  { %v120_v2 = vsub.f32 0.0, %v119_v1  ;;  %v30_v19 = vld [vmem:[%s252_s1] sm:$0xff]  ;;  %v33_v22 = vld [vmem:[%s252_s1 + $0x18] sm:$0xff]  ;;  %v39_v24 = vsub.f32 %v21_v16, %v31_v20  ;;  %v40_v26 = vsub.f32 %v22_v17, %v32_v21 }
   0x5   :  { %v38_v23 = vsub.f32 %v20_v15, %v30_v19  ;;  %v41_v27 = vsub.f32 %v23_v18, %v33_v22  ;;  %vm62_vm1 = vcmp.lt.s32.totalorder %v55_v25, 4  ;;  %vm150_vm2 = vcmp.eq.s32.totalorder %v55_v25, 0 }
   0x6   :  { %v121_v3 = vmul.f32 1.442695, %v120_v2  ;;  %v47_v29 = vmul.f32 %v39_v24, %v39_v24  ;;  %v48_v30 = vmul.f32 %v40_v26, %v40_v26  ;;  %vm151_vm3 = vcmp.eq.s32.totalorder %v142_v43, 0 }
   0x7   :  { %v46_v28 = vmul.f32 %v38_v23, %v38_v23  ;;  %v49_v31 = vmul.f32 %v41_v27, %v41_v27  ;;  %vm155_vm4 = vmand %vm150_vm2, %vm151_vm3 }
   0x8   :  { %178 = vpow2.f32 %v121_v3 }
   0x9   :  { %v72_v32 = vcombine.low %v46_v28, %v48_v30  ;;  %v73_v33 = vcombine.high %v46_v28, %v48_v30  ;;  %v74_v34 = vcombine.low %v47_v29, %v49_v31  ;;  %v75_v35 = vcombine.high %v47_v29, %v49_v31 }
   0xb   :  { %v88_v36 = vsel %vm62_vm1, %v72_v32, 0.0  ;;  %v89_v37 = vsel %vm62_vm1, %v73_v33, 0.0  ;;  %v90_v38 = vsel %vm62_vm1, %v74_v34, 0.0  ;;  %v91_v39 = vsel %vm62_vm1, %v75_v35, 0.0 }
   0xc   :  { %v105_v40 = vmul.f32 0.00024414063, %v89_v37  ;;  %v106_v41 = vmul.f32 0.00024414063, %v90_v38  ;;  %v107_v42 = vmul.f32 0.00024414063, %v91_v39  ;;  %v104_v51 = vmul.f32 0.00024414063, %v88_v36 }
   0xe   :  { %169 = vst [vmem:[%s253_s4 + $0x8] sm:$0xff] %v105_v40  ;;  %170 = vst [vmem:[%s253_s4 + $0x10] sm:$0xff] %v106_v41 }
   0xf   :  { %171 = vst [vmem:[%s253_s4 + $0x18] sm:$0xff] %v107_v42 }
  0x15   :  { %v179_v4 = vpop.eup %178 }
  0x16   :  { %v123_v5 = vadd.f32 1.0, %v179_v4 }
  0x18   :  { %180 = vlog2.f32 %v123_v5 }
  0x25   :  { %v181_v8 = vpop.eup %180 }
  0x26   :  { %v125_v9 = vmul.f32 0.6931472, %v181_v8 }
  0x28   :  { %v126_v11 = vadd.f32 %v125_v9, %v118_v7 }
  0x2a   :  { %v128_v12 = vsub.f32 %v126_v11, %v127_v10 }
  0x2c   :  { %v130_v13 = vsel %vm129_vm0, %v128_v12, 0.0 }
  0x2d   :  { %131 = vadd.xlane.f32.xlu0 %v130_v13 }
  0xb6   :  { %v132_v44 = vpop.xlane.xlu0 %131 }
  0xb7   :  { %v133_v45 = vrot.slane %v132_v44, 4 }
  0xb9   :  { %v134_v46 = vadd.f32 %v133_v45, %v132_v44 }
  0xbb   :  { %v135_v47 = vrot.slane %v134_v46, 2 }
  0xbd   :  { %v136_v48 = vadd.f32 %v135_v47, %v134_v46 }
  0xbf   :  { %v137_v49 = vrot.slane %v136_v48, 1 }
  0xc1   :  { %v138_v50 = vadd.f32 %v137_v49, %v136_v48 }
  0xc3   :  { %176 = vpush %v138_v50 }
  0xf4   :  { %s177_s11 = spop %176 }
  0xf5   :  { %s140_s12 = smul.f32 0.0125, %s177_s11 }
  0xf7   :  { %v159_v52 = vstv %s140_s12 }
  0xf8   :  { %v160_v53 = vsel %vm155_vm4, %v159_v52, 0.0 }
  0xf9   :  { %v164_v54 = vadd.f32 %v160_v53, %v104_v51 }
  0xfb   :  { %168 = vst [vmem:[%s253_s4] sm:$0xff] %v164_v54 }

</bundles_post_ra>
